<compile_context>
chip_gen: v7x
topology: tpu7x:2x2x1
jax: 0.10.0
libtpu: 0.0.40
codegen_flags: <defaults>
</compile_context>

<pallas_src>
import jax
import jax.numpy as jnp
from jax import lax
from jax.experimental import pallas as pl
from jax.experimental.pallas import tpu as pltpu

EPS = 1e-5

_LANES = 128
_SUBLANES = 8
_TILE = _LANES * _SUBLANES          # 1024 elements per (8, 128) f32 vreg tile
_DEFAULT_BLOCK_TILES = 256          # 256 tiles = 1 MiB f32 per input per buffer
_MIN_PALLAS_ELEMS = 1 << 16         # below this, plain XLA fusion wins


def _round_up(x, m):
    return (x + m - 1) // m * m


def kld_loss_ref(mu, log_sigma, eps=EPS):
    """Plain-JAX reference mirroring torch.distributions.kl_divergence."""
    mu32 = mu.astype(jnp.float32)
    var = jnp.exp(log_sigma.astype(jnp.float32)) + eps
    scale = jnp.sqrt(var)
    kl = -jnp.log(scale) + 0.5 * (scale ** 2 + mu32 ** 2) - 0.5
    return kl.sum(axis=1).mean()


def _kld_loss_pallas(mu, log_sigma, *, block_tiles=_DEFAULT_BLOCK_TILES, eps=EPS):
    assert mu.shape == log_sigma.shape and mu.ndim >= 2
    n = mu.size
    divisor = n // mu.shape[1]        # .sum(dim=1).mean() == total_sum / divisor

    tiles = pl.cdiv(n, _TILE)
    block_tiles = max(1, min(block_tiles, tiles))
    tiles_pad = _round_up(tiles, block_tiles)
    n_pad = tiles_pad * _TILE
    num_blocks = tiles_pad // block_tiles
    mask_needed = n_pad != n

    def to_slab(x):
        x = x.reshape(-1)
        if n_pad != n:
            x = jnp.pad(x, (0, n_pad - n))
        return x.reshape(tiles_pad, _SUBLANES, _LANES)

    mu_s = to_slab(mu)
    ls_s = to_slab(log_sigma)

    def kernel(mu_ref, ls_ref, out_ref):
        m = mu_ref[...].astype(jnp.float32)          # (block_tiles, 8, 128)
        s = ls_ref[...].astype(jnp.float32)
        var = jnp.exp(s) + eps                       # EUP exp (separate slot)
        # KL(N(mu, sqrt(var)) || N(0, 1)) elementwise, PyTorch-exact eps handling.
        kl = 0.5 * (var + m * m - jnp.log(var) - 1.0)
        if mask_needed:
            # Only the tail of the last block is padding; the select is cheap
            # VALU work fully hidden under the HBM roofline.
            i = pl.program_id(0)
            t = lax.broadcasted_iota(jnp.int32, kl.shape, 0)
            r = lax.broadcasted_iota(jnp.int32, kl.shape, 1)
            c = lax.broadcasted_iota(jnp.int32, kl.shape, 2)
            flat = ((i * block_tiles + t) * _SUBLANES + r) * _LANES + c
            kl = jnp.where(flat < n, kl, 0.0)
        # Per-block partial sum: reduce only over the leading (vreg-batch) axis
        # -> pure VPU adds, lane-dense (1, 8, 128) output block per grid step.
        out_ref[...] = jnp.sum(kl, axis=0, keepdims=True)

    itemsize = jnp.dtype(mu.dtype).itemsize
    partials = pl.pallas_call(
        kernel,
        out_shape=jax.ShapeDtypeStruct((num_blocks, _SUBLANES, _LANES), jnp.float32),
        grid=(num_blocks,),
        in_specs=[
            pl.BlockSpec((block_tiles, _SUBLANES, _LANES), lambda i: (i, 0, 0)),
            pl.BlockSpec((block_tiles, _SUBLANES, _LANES), lambda i: (i, 0, 0)),
        ],
        out_specs=pl.BlockSpec((1, _SUBLANES, _LANES), lambda i: (i, 0, 0)),
        compiler_params=pltpu.CompilerParams(
            dimension_semantics=("parallel",),
        ),
        cost_estimate=pl.CostEstimate(
            flops=7 * n_pad,
            transcendentals=2 * n_pad,
            bytes_accessed=2 * n_pad * itemsize + num_blocks * _TILE * 4,
        ),
    )(mu_s, ls_s)

    # Tiny final reduction + scale: fuses into neighboring XLA ops.
    return jnp.sum(partials) / jnp.float32(divisor)


def kld_loss(mu, log_sigma, *, eps=EPS, block_tiles=_DEFAULT_BLOCK_TILES,
             force_pallas=False):
    """KLDLoss.forward: KL(N(mu, sqrt(exp(log_sigma)+eps)) || N(0,1)).sum(1).mean()."""
    if not force_pallas and mu.size < _MIN_PALLAS_ELEMS:
        # At sub-64k elements the kernel is 100% fixed launch/DMA overhead;
        # let XLA fuse the elementwise + reduce for free.
        return kld_loss_ref(mu, log_sigma, eps)
    return _kld_loss_pallas(mu, log_sigma, block_tiles=block_tiles, eps=eps)


if __name__ == "__main__":
    key = jax.random.PRNGKey(0)

    def make(shape, k, dtype=jnp.float32):
        k1, k2 = jax.random.split(k)
        mu = jax.random.normal(k1, shape, dtype=jnp.float32).astype(dtype)
        ls = (0.5 * jax.random.normal(k2, shape, dtype=jnp.float32)).astype(dtype)
        return mu, ls

    keys = jax.random.split(key, 3)

    # 1) Module-sized toy case (B=8, D=32): single block, padding mask exercised.
    mu, ls = make((8, 32), keys[0])
    out = kld_loss(mu, ls, force_pallas=True)
    jax.block_until_ready(out)
    ref = kld_loss_ref(mu, ls)
    assert jnp.allclose(out, ref, rtol=5e-5, atol=1e-5), (out, ref)

    # 2) Multi-block grid ("parallel" axis) + masking: 16x100 -> 2 one-tile blocks.
    mu, ls = make((16, 100), keys[1])
    out = kld_loss(mu, ls, force_pallas=True, block_tiles=1)
    jax.block_until_ready(out)
    ref = kld_loss_ref(mu, ls)
    assert jnp.allclose(out, ref, rtol=5e-5, atol=1e-5), (out, ref)

    # 3) Multi-block, no padding, bf16 inputs (cast to f32 inside the kernel).
    mu, ls = make((32, 1024), keys[2], dtype=jnp.bfloat16)
    out = kld_loss(mu, ls, force_pallas=True, block_tiles=8)
    jax.block_until_ready(out)
    ref = kld_loss_ref(mu, ls)
    assert jnp.allclose(out, ref, rtol=1e-4, atol=1e-4), (out, ref)

    print("KERNEL_OK")
</pallas_src>

<mosaic_0001>
module attributes {stable_mosaic.version = 11 : i64} {
  func.func @kernel(%arg0: i32, %arg1: memref<1x8x128xf32, #tpu.memory_space<vmem>>, %arg2: memref<1x8x128xf32, #tpu.memory_space<vmem>>, %arg3: memref<1x8x128xf32, #tpu.memory_space<vmem>>) attributes {dimension_semantics = [#tpu.dimension_semantics<parallel>], iteration_bounds = array<i64: 1>, scalar_prefetch = 0 : i64, scratch_operands = 0 : i64, tpu.core_type = #tpu.core_type<tc>, window_params = [{transform_indices = @transform_0, window_bounds = array<i64: 1, 8, 128>}, {transform_indices = @transform_1, window_bounds = array<i64: 1, 8, 128>}, {transform_indices = @transform_2, window_bounds = array<i64: 1, 8, 128>}]} {
    %c0 = arith.constant 0 : index
    %c0_0 = arith.constant 0 : index
    %c0_1 = arith.constant 0 : index
    %0 = vector.load %arg1[%c0, %c0_0, %c0_1] : memref<1x8x128xf32, #tpu.memory_space<vmem>>, vector<1x8x128xf32>
    %c0_2 = arith.constant 0 : index
    %c0_3 = arith.constant 0 : index
    %c0_4 = arith.constant 0 : index
    %1 = vector.load %arg2[%c0_2, %c0_3, %c0_4] : memref<1x8x128xf32, #tpu.memory_space<vmem>>, vector<1x8x128xf32>
    %2 = math.exp %1 : vector<1x8x128xf32>
    %cst = arith.constant 9.99999974E-6 : f32
    %3 = vector.broadcast %cst : f32 to vector<1x8x128xf32>
    %4 = arith.addf %2, %3 : vector<1x8x128xf32>
    %5 = arith.mulf %0, %0 : vector<1x8x128xf32>
    %6 = arith.addf %4, %5 : vector<1x8x128xf32>
    %7 = math.log %4 : vector<1x8x128xf32>
    %8 = arith.subf %6, %7 : vector<1x8x128xf32>
    %cst_5 = arith.constant 1.000000e+00 : f32
    %9 = vector.broadcast %cst_5 : f32 to vector<1x8x128xf32>
    %10 = arith.subf %8, %9 : vector<1x8x128xf32>
    %cst_6 = arith.constant 5.000000e-01 : f32
    %11 = vector.broadcast %cst_6 : f32 to vector<1x8x128xf32>
    %12 = arith.mulf %11, %10 : vector<1x8x128xf32>
    %13 = tpu.iota {dimensions = array<i32: 0>} : vector<1x8x128xi32>
    %14 = tpu.iota {dimensions = array<i32: 1>} : vector<1x8x128xi32>
    %15 = tpu.iota {dimensions = array<i32: 2>} : vector<1x8x128xi32>
    %c1_i32 = arith.constant 1 : i32
    %16 = arith.muli %arg0, %c1_i32 : i32
    %17 = vector.broadcast %16 : i32 to vector<1x8x128xi32>
    %18 = arith.addi %17, %13 : vector<1x8x128xi32>
    %c8_i32 = arith.constant 8 : i32
    %19 = vector.broadcast %c8_i32 : i32 to vector<1x8x128xi32>
    %20 = arith.muli %18, %19 : vector<1x8x128xi32>
    %21 = arith.addi %20, %14 : vector<1x8x128xi32>
    %c128_i32 = arith.constant 128 : i32
    %22 = vector.broadcast %c128_i32 : i32 to vector<1x8x128xi32>
    %23 = arith.muli %21, %22 : vector<1x8x128xi32>
    %24 = arith.addi %23, %15 : vector<1x8x128xi32>
    %c256_i32 = arith.constant 256 : i32
    %25 = vector.broadcast %c256_i32 : i32 to vector<1x8x128xi32>
    %26 = arith.cmpi slt, %24, %25 : vector<1x8x128xi32>
    %cst_7 = arith.constant 0.000000e+00 : f32
    %27 = vector.broadcast %cst_7 : f32 to vector<1x8x128xf32>
    %28 = arith.select %26, %12, %27 : vector<1x8x128xi1>, vector<1x8x128xf32>
    %cst_8 = arith.constant dense<0.000000e+00> : vector<8x128xf32>
    %29 = vector.multi_reduction <add>, %28, %cst_8 [0] : vector<1x8x128xf32> to vector<8x128xf32>
    %30 = vector.shape_cast %29 : vector<8x128xf32> to vector<1x8x128xf32>
    %c0_9 = arith.constant 0 : index
    %c0_10 = arith.constant 0 : index
    %c0_11 = arith.constant 0 : index
    %31 = vector.load %arg3[%c0_9, %c0_10, %c0_11] : memref<1x8x128xf32, #tpu.memory_space<vmem>>, vector<1x8x128xf32>
    tpu.vector_store %arg3[%c0_9, %c0_10, %c0_11], %30 {strides = array<i32>} : memref<1x8x128xf32, #tpu.memory_space<vmem>>, vector<1x8x128xf32>,
    return
  }
  func.func @transform_0(%arg0: i32) -> (i32, i32, i32) {
    %c0_i32 = arith.constant 0 : i32
    %c0_i32_0 = arith.constant 0 : i32
    %c0_i32_1 = arith.constant 0 : i32
    return %arg0, %c0_i32, %c0_i32_0 : i32, i32, i32
  }
  func.func @transform_1(%arg0: i32) -> (i32, i32, i32) {
    %c0_i32 = arith.constant 0 : i32
    %c0_i32_0 = arith.constant 0 : i32
    %c0_i32_1 = arith.constant 0 : i32
    return %arg0, %c0_i32, %c0_i32_0 : i32, i32, i32
  }
  func.func @transform_2(%arg0: i32) -> (i32, i32, i32) {
    %c0_i32 = arith.constant 0 : i32
    %c0_i32_0 = arith.constant 0 : i32
    %c0_i32_1 = arith.constant 0 : i32
    return %arg0, %c0_i32, %c0_i32_0 : i32, i32, i32
  }
}

</mosaic_0001>

<bundles_post_ra>
// kernel: tpu_custom_call.1
= control target key start
LH: loop header
LB: loop body
LE: loop exit
PB: predicated region body
PF: predicated region fallthrough
CT: control target
= control target key end

     0   :  { %7 = vsyncpa [#allocation3], 0  ;;  %s211_s0 = inlined_call_operand.hbm [shape: f32[1,8,128], index: 0, kind: input, shape index: {}]   ;;  %s212_s1 = inlined_call_operand.hbm [shape: f32[1,8,128], index: 1, kind: input, shape index: {}]   ;;  %s213_s2 = inlined_call_operand.hbm [shape: f32[1,8,128], index: 2, kind: output, shape index: {}]  }
   0x1   :  { %8 = vsyncpa [#allocation6], 0 }
   0x2   :  { %9 = vsyncpa [#allocation4], 0  ;;  %s157_s9 = smov [#allocation2]   ;;  %s158_s11 = smov [#allocation5]  }
   0x3   :  { %s16_s10 = sshll.u32 %s157_s9, 4  ;;  %s26_s12 = sshll.u32 %s158_s11, 4  ;;  %s17_s10 = int_to_ptr.vmem [resolvable:$true] %s16_s10  ;;  %s27_s12 = int_to_ptr.vmem [resolvable:$true] %s26_s12 }
   0x4   :  { %s85_s15 = scalar_lea.hbm %s211_s0, 128 }
   0x5   :  { %p86_p0 = scmp.ne.s32.totalorder %s211_s0, %s85_s15  ;;  %p89_p1 = scmp.lt.u32.totalorder %s85_s15, %s211_s0 }
   0x7   :  { %p91_p2 = pnand %p89_p1, %p86_p0 }
   0x9   :  { %94 = shalt.err (!%p91_p2)
}
   0xa   :  { %s95_s20 = scalar_lea.vmem %s17_s10, 128  ;;  %p100_p4 = scmp.lt.s32.totalorder %s17_s10, %s17_s10 }
   0xb   :  { %p96_p3 = scmp.ne.s32.totalorder %s17_s10, %s95_s20  ;;  %p101_p5 = scmp.lt.s32.totalorder %s95_s20, %s95_s20 }
   0xd   :  { %p102_p6 = por %p101_p5, %p100_p4 }
   0xf   :  { %p103_p7 = pnand %p102_p6, %p96_p3 }
  0x11   :  { %106 = shalt.err (!%p103_p7)
}
  0x12   :  { %19 = dma.hbm_to_vmem [thread:$0]  %s211_s0, 128, %s17_s10, [#allocation3]  }
  0x13   :  { %s107_s25 = scalar_lea.hbm %s212_s1, 128 }
  0x14   :  { %p108_p8 = scmp.ne.s32.totalorder %s212_s1, %s107_s25  ;;  %p111_p9 = scmp.lt.u32.totalorder %s107_s25, %s212_s1 }
  0x16   :  { %p113_p10 = pnand %p111_p9, %p108_p8 }
  0x18   :  { %116 = shalt.err (!%p113_p10)
}
  0x19   :  { %s117_s30 = scalar_lea.vmem %s27_s12, 128  ;;  %p122_p12 = scmp.lt.s32.totalorder %s27_s12, %s27_s12 }
  0x1a   :  { %p118_p11 = scmp.ne.s32.totalorder %s27_s12, %s117_s30  ;;  %p123_p13 = scmp.lt.s32.totalorder %s117_s30, %s117_s30 }
  0x1c   :  { %p124_p0 = por %p123_p13, %p122_p12 }
  0x1e   :  { %p125_p1 = pnand %p124_p0, %p118_p11 }
  0x20   :  { %128 = shalt.err (!%p125_p1)
}
  0x21   :  { %29 = dma.hbm_to_vmem [thread:$0]  %s212_s1, 128, %s27_s12, [#allocation6]  }
  0x22   :  { %151 = dma.done.wait [#allocation3], 128  }
  0x23   :  { %152 = vsyncadd [#allocation3], 4294967168 }
  0x24   :  { %153 = dma.done.wait [#allocation6], 128  }
  0x25   :  { %154 = vsyncadd [#allocation6], 4294967168  ;;  %v37_v0 = vld [vmem:[#allocation5] sm:$0xff]  ;;  %v48_v4 = vlaneseq  ;;  %v36_v5 = vld [vmem:[#allocation2] sm:$0xff]  ;;  %s159_s1 = smov [#allocation7]  }
  0x26   :  { %v38_v1 = vmul.f32 1.442695, %v37_v0  ;;  %v41_v7 = vmul.f32 %v36_v5, %v36_v5  ;;  %s67_s4 = sshll.u32 %s159_s1, 4  ;;  %s68_s4 = int_to_ptr.vmem [resolvable:$true] %s67_s4 }
  0x27   :  { %v49_v6 = vshrl.u32 %v48_v4, 7  ;;  %v51_v8 = vand.u32 127, %v48_v4  ;;  %s129_s5 = scalar_lea.vmem %s68_s4, 128  ;;  %p134_p3 = scmp.lt.s32.totalorder %s68_s4, %s68_s4 }
  0x28   :  { %81 = vpow2.f32 %v38_v1  ;;  %p130_p2 = scmp.ne.s32.totalorder %s68_s4, %s129_s5  ;;  %p135_p4 = scmp.lt.s32.totalorder %s129_s5, %s129_s5 }
  0x29   :  { %v55_v9 = vmul.u32 128, %v49_v6 }
  0x2a   :  { %p136_p5 = por %p135_p4, %p134_p3 }
  0x2b   :  { %v56_v13 = vadd.s32 %v55_v9, %v51_v8 }
  0x2c   :  { %p137_p6 = pnand %p136_p5, %p130_p2 }
  0x2d   :  { %vm57_vm0 = vcmp.lt.s32.totalorder %v56_v13, 256 }
  0x32   :  { %v82_v2 = vpop.eup %81 }
  0x33   :  { %v40_v3 = vadd.f32 1e-05, %v82_v2 }
  0x35   :  { %83 = vlog2.f32 %v40_v3  ;;  %v42_v10 = vadd.f32 %v41_v7, %v40_v3 }
  0x3f   :  { %v84_v11 = vpop.eup %83 }
  0x40   :  { %v44_v12 = vmul.f32 0.6931472, %v84_v11 }
  0x42   :  { %v45_v14 = vsub.f32 %v42_v10, %v44_v12 }
  0x44   :  { %v77_v15 = vadd.f32 -1.0, %v45_v14 }
  0x46   :  { %v47_v16 = vmul.f32 0.5, %v77_v15 }
  0x48   :  { %v58_v17 = vsel %vm57_vm0, %v47_v16, 0.0 }
  0x49   :  { %60 = vst [vmem:[#allocation7] sm:$0xff] %v58_v17 }
  0x4a   :  { %140 = shalt.err (!%p137_p6)
}
  0x4b   :  { %s141_s8 = scalar_lea.hbm %s213_s2, 128 }
  0x4c   :  { %p142_p7 = scmp.ne.s32.totalorder %s213_s2, %s141_s8  ;;  %p145_p8 = scmp.lt.u32.totalorder %s141_s8, %s213_s2 }
  0x4e   :  { %p147_p9 = pnand %p145_p8, %p142_p7 }
  0x50   :  { %150 = shalt.err (!%p147_p9)
}
  0x51   :  { %70 = dma.vmem_to_hbm [thread:$0]  %s68_s4, 128, %s213_s2, [#allocation4]  }
  0x52   :  { %155 = dma.done.wait [#allocation4], 128  }
  0x53   :  { %156 = vsyncadd [#allocation4], 4294967168 }
  0x54   :  { %74 = vsyncpa [#allocation3], 1 }
  0x55   :  { %75 = vsyncpa [#allocation6], 1 }
  0x56   :  { %76 = vsyncpa [#allocation4], 1 }

</bundles_post_ra>
